<compile_context>
chip_gen: v7x
topology: tpu7x:2x2x1
jax: 0.10.0
libtpu: 0.0.40
codegen_flags: <defaults>
</compile_context>

<pallas_src>
import functools

import jax
import jax.numpy as jnp
from jax.experimental import pallas as pl
from jax.experimental.pallas import tpu as pltpu


def _decoder_kernel(n_layers, x_ref, *refs):
    """Fused Linear+ReLU stack.

    x_ref:  (B_tile, C_in)          batch-major input block
    refs:   (W_0, b_0, ..., W_{L-1}, b_{L-1}, o_ref)
            W_i: (C_out_i, C_in_i)  native PyTorch nn.Linear weight layout
            b_i: (C_out_i, 1)       broadcasts across the lane (batch) axis
    o_ref:  (B_tile, C_out_last)    batch-major output block
    """
    o_ref = refs[-1]
    params = refs[:-1]

    # In-kernel transpose (XLU) -> channel-major, batch on the lane axis.
    h = x_ref[...].T                         # (C_in, B_tile)
    for i in range(n_layers):
        w = params[2 * i][...]               # (C_out, C_in)
        b = params[2 * i + 1][...]           # (C_out, 1)
        h = jnp.dot(w, h, preferred_element_type=jnp.float32) + b
        h = jnp.maximum(h, 0.0)              # ReLU
    # Transpose back and store batch-major (no wrapper-side relayout needed).
    o_ref[...] = h.T.astype(o_ref.dtype)


def _pick_batch_tile(batch):
    """Single tile for small B; 256-512 (even tile count preferred) for large B."""
    b128 = pl.cdiv(batch, 128) * 128
    if b128 <= 512:
        return b128                          # n_tiles == 1
    for t in (512, 384, 256):                # prefer even n_tiles for v7x megacore
        if pl.cdiv(batch, t) % 2 == 0:
            return t
    return 512


def decoder_forward(x, weights, biases, *, batch_tile=None):
    """Runs the fused Linear+ReLU stack.

    x:       (B, channels[0]) float32, batch-major (PyTorch layout)
    weights: list of (channels[i+1], channels[i]) float32   (PyTorch layout)
    biases:  list of (channels[i+1], 1) float32
    Returns (B, channels[-1]) float32, batch-major.

    batch_tile: rows per grid step (multiple of 128 lanes).  Default picks
                round_up(B, 128) capped at 512 -- the cap is vreg residency of
                the chained per-layer activations, not VMEM.
    """
    n_layers = len(weights)
    B, c_in = x.shape
    c_out = weights[-1].shape[0]

    if batch_tile is None:
        batch_tile = _pick_batch_tile(B)
    assert batch_tile % 128 == 0, "batch_tile must be a multiple of 128 lanes"
    n_tiles = pl.cdiv(B, batch_tile)

    kernel = functools.partial(_decoder_kernel, n_layers)

    in_specs = [pl.BlockSpec((batch_tile, c_in), lambda i: (i, 0))]
    flat_args = [x]
    for w, b in zip(weights, biases):
        # Constant-index blocks: weights/biases stay resident in VMEM across
        # the whole batch loop.
        in_specs.append(pl.BlockSpec(w.shape, lambda i: (0, 0)))
        in_specs.append(pl.BlockSpec(b.shape, lambda i: (0, 0)))
        flat_args.extend([w, b])

    out_spec = pl.BlockSpec((batch_tile, c_out), lambda i: (i, 0))

    flops = 2 * B * sum(w.shape[0] * w.shape[1] for w in weights)
    bytes_accessed = 4 * (B * c_in + B * c_out
                          + sum(int(w.size) for w in weights)
                          + sum(int(b.size) for b in biases))

    out = pl.pallas_call(
        kernel,
        out_shape=jax.ShapeDtypeStruct((B, c_out), x.dtype),
        grid_spec=pltpu.PrefetchScalarGridSpec(
            num_scalar_prefetch=0,
            grid=(n_tiles,),
            in_specs=in_specs,
            out_specs=out_spec,
        ),
        compiler_params=pltpu.CompilerParams(
            dimension_semantics=("parallel",)),
        cost_estimate=pl.CostEstimate(
            flops=flops, transcendentals=0, bytes_accessed=bytes_accessed),
    )(*flat_args)

    return out


def init_decoder_params(key, channels):
    """Init matching nn.Linear's default U(-1/sqrt(fan_in), +1/sqrt(fan_in)).

    Weights are kept in native PyTorch (out_features, in_features) layout.
    """
    weights, biases = [], []
    for i in range(len(channels) - 1):
        fan_in, fan_out = channels[i], channels[i + 1]
        key, kw, kb = jax.random.split(key, 3)
        bound = 1.0 / jnp.sqrt(fan_in)
        w = jax.random.uniform(kw, (fan_out, fan_in), jnp.float32, -bound, bound)
        b = jax.random.uniform(kb, (fan_out, 1), jnp.float32, -bound, bound)
        weights.append(w)
        biases.append(b)
    return weights, biases


def decoder_reference(x, weights, biases):
    h = x
    for w, b in zip(weights, biases):
        h = jnp.maximum(h @ w.T + b[:, 0], 0.0)
    return h


if __name__ == "__main__":
    # Decoder(channels=[32, 64, 16], stride=...); stride/kernel_size are unused
    # by the forward pass (ignored in the PyTorch __init__ as well).
    channels = [32, 64, 16]
    batch = 300  # NOT a multiple of 128 -> exercises the masked edge-block path

    key = jax.random.PRNGKey(0)
    key, kx = jax.random.split(key)
    x = jax.random.normal(kx, (batch, channels[0]), jnp.float32)

    weights, biases = init_decoder_params(key, channels)

    # Default tile -> round_up(300, 128) = 384 -> single grid step.
    out = decoder_forward(x, weights, biases)
    out = jax.block_until_ready(out)

    ref = decoder_reference(x, weights, biases)
    assert out.shape == (batch, channels[-1])
    assert jnp.allclose(out, ref, atol=1e-5, rtol=1e-5), "mismatch vs reference"

    print("KERNEL_OK")
</pallas_src>

<mosaic_0001>
module attributes {stable_mosaic.version = 11 : i64} {
  func.func @_decoder_kernel(%arg0: i32, %arg1: memref<384x32xf32, #tpu.memory_space<vmem>>, %arg2: memref<64x32xf32, #tpu.memory_space<vmem>>, %arg3: memref<64x1xf32, #tpu.memory_space<vmem>>, %arg4: memref<16x64xf32, #tpu.memory_space<vmem>>, %arg5: memref<16x1xf32, #tpu.memory_space<vmem>>, %arg6: memref<384x16xf32, #tpu.memory_space<vmem>>) attributes {dimension_semantics = [#tpu.dimension_semantics<parallel>], iteration_bounds = array<i64: 1>, scalar_prefetch = 0 : i64, scratch_operands = 0 : i64, tpu.core_type = #tpu.core_type<tc>, window_params = [{transform_indices = @transform_0, window_bounds = array<i64: 384, 32>}, {pipeline_mode = #tpu.pipeline_mode<synchronous>, transform_indices = @transform_1, window_bounds = array<i64: 64, 32>}, {pipeline_mode = #tpu.pipeline_mode<synchronous>, transform_indices = @transform_2, window_bounds = array<i64: 64, 1>}, {pipeline_mode = #tpu.pipeline_mode<synchronous>, transform_indices = @transform_3, window_bounds = array<i64: 16, 64>}, {pipeline_mode = #tpu.pipeline_mode<synchronous>, transform_indices = @transform_4, window_bounds = array<i64: 16, 1>}, {transform_indices = @transform_5, window_bounds = array<i64: 384, 16>}]} {
    %c0 = arith.constant 0 : index
    %c0_0 = arith.constant 0 : index
    %0 = vector.load %arg1[%c0, %c0_0] : memref<384x32xf32, #tpu.memory_space<vmem>>, vector<384x32xf32>
    %1 = tpu.transpose %0, [1, 0] : vector<384x32xf32> -> vector<32x384xf32>
    %c0_1 = arith.constant 0 : index
    %c0_2 = arith.constant 0 : index
    %2 = vector.load %arg2[%c0_1, %c0_2] : memref<64x32xf32, #tpu.memory_space<vmem>>, vector<64x32xf32>
    %c0_3 = arith.constant 0 : index
    %c0_4 = arith.constant 0 : index
    %3 = vector.load %arg3[%c0_3, %c0_4] : memref<64x1xf32, #tpu.memory_space<vmem>>, vector<64x1xf32>
    %cst = arith.constant dense<0.000000e+00> : vector<64x384xf32>
    %4 = tpu.matmul %2, %1, %cst {dimension_numbers = #tpu.dot_dimension_numbers<[1], [0], [0], [1], [0, 0, 1, 1], [], []>} : vector<64x32xf32>, vector<32x384xf32>, vector<64x384xf32> -> vector<64x384xf32>
    %5 = vector.broadcast %3 : vector<64x1xf32> to vector<64x384xf32>
    %6 = arith.addf %4, %5 : vector<64x384xf32>
    %cst_5 = arith.constant 0.000000e+00 : f32
    %7 = vector.broadcast %cst_5 : f32 to vector<64x384xf32>
    %8 = arith.maximumf %6, %7 : vector<64x384xf32>
    %c0_6 = arith.constant 0 : index
    %c0_7 = arith.constant 0 : index
    %9 = vector.load %arg4[%c0_6, %c0_7] : memref<16x64xf32, #tpu.memory_space<vmem>>, vector<16x64xf32>
    %c0_8 = arith.constant 0 : index
    %c0_9 = arith.constant 0 : index
    %10 = vector.load %arg5[%c0_8, %c0_9] : memref<16x1xf32, #tpu.memory_space<vmem>>, vector<16x1xf32>
    %cst_10 = arith.constant dense<0.000000e+00> : vector<16x384xf32>
    %11 = tpu.matmul %9, %8, %cst_10 {dimension_numbers = #tpu.dot_dimension_numbers<[1], [0], [0], [1], [0, 0, 1, 1], [], []>} : vector<16x64xf32>, vector<64x384xf32>, vector<16x384xf32> -> vector<16x384xf32>
    %12 = vector.broadcast %10 : vector<16x1xf32> to vector<16x384xf32>
    %13 = arith.addf %11, %12 : vector<16x384xf32>
    %cst_11 = arith.constant 0.000000e+00 : f32
    %14 = vector.broadcast %cst_11 : f32 to vector<16x384xf32>
    %15 = arith.maximumf %13, %14 : vector<16x384xf32>
    %16 = tpu.transpose %15, [1, 0] : vector<16x384xf32> -> vector<384x16xf32>
    %c0_12 = arith.constant 0 : index
    %c0_13 = arith.constant 0 : index
    %17 = vector.load %arg6[%c0_12, %c0_13] : memref<384x16xf32, #tpu.memory_space<vmem>>, vector<384x16xf32>
    tpu.vector_store %arg6[%c0_12, %c0_13], %16 {strides = array<i32>} : memref<384x16xf32, #tpu.memory_space<vmem>>, vector<384x16xf32>,
    return
  }
  func.func @transform_0(%arg0: i32) -> (i32, i32) {
    %c0_i32 = arith.constant 0 : i32
    %c0_i32_0 = arith.constant 0 : i32
    return %arg0, %c0_i32 : i32, i32
  }
  func.func @transform_1(%arg0: i32) -> (i32, i32) {
    %c0_i32 = arith.constant 0 : i32
    %c0_i32_0 = arith.constant 0 : i32
    %c0_i32_1 = arith.constant 0 : i32
    return %c0_i32, %c0_i32_0 : i32, i32
  }
  func.func @transform_2(%arg0: i32) -> (i32, i32) {
    %c0_i32 = arith.constant 0 : i32
    %c0_i32_0 = arith.constant 0 : i32
    %c0_i32_1 = arith.constant 0 : i32
    return %c0_i32, %c0_i32_0 : i32, i32
  }
  func.func @transform_3(%arg0: i32) -> (i32, i32) {
    %c0_i32 = arith.constant 0 : i32
    %c0_i32_0 = arith.constant 0 : i32
    %c0_i32_1 = arith.constant 0 : i32
    return %c0_i32, %c0_i32_0 : i32, i32
  }
  func.func @transform_4(%arg0: i32) -> (i32, i32) {
    %c0_i32 = arith.constant 0 : i32
    %c0_i32_0 = arith.constant 0 : i32
    %c0_i32_1 = arith.constant 0 : i32
    return %c0_i32, %c0_i32_0 : i32, i32
  }
  func.func @transform_5(%arg0: i32) -> (i32, i32) {
    %c0_i32 = arith.constant 0 : i32
    %c0_i32_0 = arith.constant 0 : i32
    return %arg0, %c0_i32 : i32, i32
  }
}

</mosaic_0001>

<bundles_post_ra>
// kernel: tpu_custom_call.1
= control target key start
LH: loop header
LB: loop body
LE: loop exit
PB: predicated region body
PF: predicated region fallthrough
CT: control target
= control target key end

     0   :  { %vm124_vm0 = vcmask 261120   ;;  %v1392_v7 = vmov 0   ;;  %vm549_vm2 = vcmask 523264   ;;  %vm810_vm3 = vcmask 130048   ;;  %s1899_s0 = inlined_call_operand.vmem [shape: f32[300,32], index: 0, kind: input, shape index: {}]   ;;  %s1900_s1 = inlined_call_operand.vmem [shape: f32[64,32], index: 1, kind: input, shape index: {}]   ;;  %s1901_s2 = inlined_call_operand.vmem [shape: f32[64,1], index: 2, kind: input, shape index: {}]   ;;  %s1902_s3 = inlined_call_operand.vmem [shape: f32[16,64], index: 3, kind: input, shape index: {}]   ;;  %s1903_s4 = inlined_call_operand.vmem [shape: f32[16,1], index: 4, kind: input, shape index: {}]   ;;  %s1904_s5 = inlined_call_operand.vmem [shape: f32[300,16], index: 5, kind: output, shape index: {}]  }
   0x1   :  { %v36_v0 = vld [vmem:[%s1899_s0 + $0x80] sm:$0xff]  ;;  %v37_v1 = vld [vmem:[%s1899_s0 + $0x88] sm:$0xff]  ;;  %vm1435_vm1 = vmpackc.low %vm124_vm0, %vm124_vm0  ;;  %1390 = vset.pattern.permute.xlu0 %v1392_v7  ;;  %1391 = vset.pattern.permute.xlu1 %v1392_v7 }
   0x2   :  { %v52_v2 = vld [vmem:[%s1899_s0 + $0x100] sm:$0xff]  ;;  %v1260_v3 = vpack.c.bf16 %v37_v1, %v36_v0  ;;  %v53_v5 = vld [vmem:[%s1899_s0 + $0x108] sm:$0xff]  ;;  %v38_v10 = vld [vmem:[%s1899_s0 + $0x90] sm:$0xff] }
   0x3   :  { %v20_v6 = vld [vmem:[%s1899_s0] sm:$0xff]  ;;  %v1308_v8 = vpack.c.bf16 %v53_v5, %v52_v2  ;;  %v21_v9 = vld [vmem:[%s1899_s0 + $0x8] sm:$0xff]  ;;  %v39_v11 = vld [vmem:[%s1899_s0 + $0x98] sm:$0xff] }
   0x4   :  { %1262 = vmatprep.subr.msk.bf16.mxu0 %vm1435_vm1, %v1260_v3  ;;  %v1263_v12 = vpack.c.bf16 %v21_v9, %v20_v6  ;;  %v1266_v13 = vpack.c.bf16 %v39_v11, %v38_v10  ;;  %v54_v14 = vld [vmem:[%s1899_s0 + $0x110] sm:$0xff]  ;;  %v55_v15 = vld [vmem:[%s1899_s0 + $0x118] sm:$0xff]  ;;  %v40_v19 = vld [vmem:[%s1899_s0 + $0xa0] sm:$0xff] }
   0x5   :  { %1310 = vmatprep.subr.msk.bf16.mxu1 %vm1435_vm1, %v1308_v8  ;;  %v1314_v16 = vpack.c.bf16 %v55_v15, %v54_v14  ;;  %v22_v17 = vld [vmem:[%s1899_s0 + $0x10] sm:$0xff]  ;;  %v23_v18 = vld [vmem:[%s1899_s0 + $0x18] sm:$0xff]  ;;  %v41_v20 = vld [vmem:[%s1899_s0 + $0xa8] sm:$0xff] }
   0x6   :  { %1265 = vmatpush3.bf16.xpose.msk.msra.mxu0 %vm1435_vm1, %v1263_v12  ;;  %1313 = vmatpush3.bf16.xpose.msk.msra.mxu1 %vm1435_vm1, %v1308_v8  ;;  %v56_v21 = vld [vmem:[%s1899_s0 + $0x120] sm:$0xff]  ;;  %v57_v22 = vld [vmem:[%s1899_s0 + $0x128] sm:$0xff]  ;;  %v1269_v23 = vpack.c.bf16 %v23_v18, %v22_v17  ;;  %v1272_v24 = vpack.c.bf16 %v41_v20, %v40_v19  ;;  %v42_v28 = vld [vmem:[%s1899_s0 + $0xb0] sm:$0xff] }
   0x7   :  { %1268 = vmatprep.subr.msk.bf16.mxu0 %vm1435_vm1, %v1266_v13  ;;  %1316 = vmatprep.subr.msk.bf16.mxu1 %vm1435_vm1, %v1314_v16  ;;  %v1320_v25 = vpack.c.bf16 %v57_v22, %v56_v21  ;;  %v24_v26 = vld [vmem:[%s1899_s0 + $0x20] sm:$0xff]  ;;  %v25_v27 = vld [vmem:[%s1899_s0 + $0x28] sm:$0xff]  ;;  %v43_v29 = vld [vmem:[%s1899_s0 + $0xb8] sm:$0xff] }
   0x8   :  { %v58_v30 = vld [vmem:[%s1899_s0 + $0x130] sm:$0xff]  ;;  %v59_v31 = vld [vmem:[%s1899_s0 + $0x138] sm:$0xff]  ;;  %v1519_v32 = vld [vmem:[%s1900_s1] sm:$0xff]  ;;  %v1275_v33 = vpack.c.bf16 %v25_v27, %v24_v26  ;;  %v1278_v34 = vpack.c.bf16 %v43_v29, %v42_v28  ;;  %v1393_v29 = vmov 0.0  }
   0x9   :  { %1147 = vmatprep.mubr.msk.f32.mxu0 %vm124_vm0, %v1519_v32  ;;  %1229 = vmatprep.mubr.msk.f32.mxu1 %vm124_vm0, %v1519_v32  ;;  %v1326_v35 = vpack.c.bf16 %v59_v31, %v58_v30  ;;  %v76_v36 = vld [vmem:[%s1901_s2] sm:$0xff]  ;;  %v78_v37 = vld [vmem:[%s1901_s2 + $0x10] sm:$0xff]  ;;  %v77_v38 = vld [vmem:[%s1901_s2 + $0x8] sm:$0xff] }
   0xa   :  { %86 = vperm.xlu0 %1390, %v76_v36   ;;  %96 = vperm.xlu1 %1391, %v78_v37   ;;  %v79_v39 = vld [vmem:[%s1901_s2 + $0x18] sm:$0xff]  ;;  %v26_v40 = vld [vmem:[%s1899_s0 + $0x30] sm:$0xff]  ;;  %v44_v42 = vld [vmem:[%s1899_s0 + $0xc0] sm:$0xff] }
   0xb   :  { %v27_v41 = vld [vmem:[%s1899_s0 + $0x38] sm:$0xff]  ;;  %v45_v43 = vld [vmem:[%s1899_s0 + $0xc8] sm:$0xff]  ;;  %v60_v44 = vld [vmem:[%s1899_s0 + $0x140] sm:$0xff] }
   0xc   :  { %v61_v45 = vld [vmem:[%s1899_s0 + $0x148] sm:$0xff]  ;;  %v1281_v46 = vpack.c.bf16 %v27_v41, %v26_v40  ;;  %v80_v47 = vld [vmem:[%s1901_s2 + $0x20] sm:$0xff]  ;;  %v1284_v49 = vpack.c.bf16 %v45_v43, %v44_v42  ;;  %v82_v51 = vld [vmem:[%s1901_s2 + $0x30] sm:$0xff] }
   0xd   :  { %v81_v48 = vld [vmem:[%s1901_s2 + $0x28] sm:$0xff]  ;;  %v1332_v50 = vpack.c.bf16 %v61_v45, %v60_v44  ;;  %v83_v52 = vld [vmem:[%s1901_s2 + $0x38] sm:$0xff]  ;;  %v28_v53 = vld [vmem:[%s1899_s0 + $0x40] sm:$0xff] }
   0xe   :  { %1271 = vmatpush3.bf16.xpose.msk.msra.mxu0 %vm1435_vm1, %v1269_v23  ;;  %1319 = vmatpush3.bf16.xpose.msk.msra.mxu1 %vm1435_vm1, %v1314_v16  ;;  %v29_v54 = vld [vmem:[%s1899_s0 + $0x48] sm:$0xff]  ;;  %v46_v55 = vld [vmem:[%s1899_s0 + $0xd0] sm:$0xff]  ;;  %v47_v56 = vld [vmem:[%s1899_s0 + $0xd8] sm:$0xff] }
   0xf   :  { %1274 = vmatprep.subr.msk.bf16.mxu0 %vm1435_vm1, %v1272_v24  ;;  %1322 = vmatprep.subr.msk.bf16.mxu1 %vm1435_vm1, %v1320_v25  ;;  %v62_v57 = vld [vmem:[%s1899_s0 + $0x150] sm:$0xff]  ;;  %v63_v58 = vld [vmem:[%s1899_s0 + $0x158] sm:$0xff]  ;;  %v1287_v59 = vpack.c.bf16 %v29_v54, %v28_v53  ;;  %v537_v60 = vld [vmem:[%s1903_s4] sm:$0xff]  ;;  %v1290_v62 = vpack.c.bf16 %v47_v56, %v46_v55 }
  0x10   :  { %91 = vperm.xlu0 %1390, %v77_v38   ;;  %101 = vperm.xlu1 %1391, %v79_v39   ;;  %v538_v61 = vld [vmem:[%s1903_s4 + $0x8] sm:$0xff]  ;;  %v1338_v63 = vpack.c.bf16 %v63_v58, %v62_v57  ;;  %v30_v0 = vld [vmem:[%s1899_s0 + $0x50] sm:$0xff]  ;;  %v31_v1 = vld [vmem:[%s1899_s0 + $0x58] sm:$0xff] }
  0x11   :  { %v48_v2 = vld [vmem:[%s1899_s0 + $0xe0] sm:$0xff]  ;;  %v49_v3 = vld [vmem:[%s1899_s0 + $0xe8] sm:$0xff]  ;;  %v1293_v7 = vpack.c.bf16 %v31_v1, %v30_v0  ;;  %v50_v12 = vld [vmem:[%s1899_s0 + $0xf0] sm:$0xff] }
  0x12   :  { %v64_v5 = vld [vmem:[%s1899_s0 + $0x160] sm:$0xff]  ;;  %v65_v6 = vld [vmem:[%s1899_s0 + $0x168] sm:$0xff]  ;;  %v1296_v8 = vpack.c.bf16 %v49_v3, %v48_v2  ;;  %v51_v13 = vld [vmem:[%s1899_s0 + $0xf8] sm:$0xff] }
  0x13   :  { %v1344_v9 = vpack.c.bf16 %v65_v6, %v64_v5  ;;  %v32_v10 = vld [vmem:[%s1899_s0 + $0x60] sm:$0xff]  ;;  %v33_v11 = vld [vmem:[%s1899_s0 + $0x68] sm:$0xff]  ;;  %v66_v14 = vld [vmem:[%s1899_s0 + $0x170] sm:$0xff]  ;;  %v1302_v17 = vpack.c.bf16 %v51_v13, %v50_v12 }
  0x14   :  { %106 = vperm.xlu0 %1390, %v80_v47   ;;  %111 = vperm.xlu1 %1391, %v81_v48   ;;  %v67_v15 = vld [vmem:[%s1899_s0 + $0x178] sm:$0xff]  ;;  %v1299_v16 = vpack.c.bf16 %v33_v11, %v32_v10  ;;  %v34_v19 = vld [vmem:[%s1899_s0 + $0x70] sm:$0xff]  ;;  %v69_v22 = vld [vmem:[%s1900_s1 + $0x8] sm:$0xff] }
  0x15   :  { %v1350_v18 = vpack.c.bf16 %v67_v15, %v66_v14  ;;  %v35_v20 = vld [vmem:[%s1899_s0 + $0x78] sm:$0xff]  ;;  %v70_v23 = vld [vmem:[%s1900_s1 + $0x10] sm:$0xff]  ;;  %v72_v24 = vld [vmem:[%s1900_s1 + $0x20] sm:$0xff] }
  0x16   :  { %1277 = vmatpush3.bf16.xpose.msk.msra.mxu0 %vm1435_vm1, %v1275_v33  ;;  %1325 = vmatpush3.bf16.xpose.msk.msra.mxu1 %vm1435_vm1, %v1320_v25  ;;  %v1305_v21 = vpack.c.bf16 %v35_v20, %v34_v19  ;;  %v71_v4 = vld [vmem:[%s1900_s1 + $0x18] sm:$0xff]  ;;  %v73_v25 = vld [vmem:[%s1900_s1 + $0x28] sm:$0xff]  ;;  %v74_v26 = vld [vmem:[%s1900_s1 + $0x30] sm:$0xff] }
  0x17   :  { %1280 = vmatprep.subr.msk.bf16.mxu0 %vm1435_vm1, %v1278_v34  ;;  %1328 = vmatprep.subr.msk.bf16.mxu1 %vm1435_vm1, %v1326_v35  ;;  %v75_v27 = vld [vmem:[%s1900_s1 + $0x38] sm:$0xff]  ;;  %v1724_v28 = vld [vmem:[%s1902_s3] sm:$0xff] }
  0x18   :  { %116 = vperm.xlu0 %1390, %v82_v51   ;;  %121 = vperm.xlu1 %1391, %v83_v52  }
  0x1c   :  { %541 = vperm.xlu0 %1390, %v537_v60   ;;  %546 = vperm.xlu1 %1391, %v538_v61  }
  0x1e   :  { %1283 = vmatpush3.bf16.xpose.msk.msra.mxu0 %vm1435_vm1, %v1281_v46  ;;  %1331 = vmatpush3.bf16.xpose.msk.msra.mxu1 %vm1435_vm1, %v1326_v35 }
  0x1f   :  { %1286 = vmatprep.subr.msk.bf16.mxu0 %vm1435_vm1, %v1284_v49  ;;  %1334 = vmatprep.subr.msk.bf16.mxu1 %vm1435_vm1, %v1332_v50 }
  0x26   :  { %1289 = vmatpush3.bf16.xpose.msk.msra.mxu0 %vm1435_vm1, %v1287_v59  ;;  %1337 = vmatpush3.bf16.xpose.msk.msra.mxu1 %vm1435_vm1, %v1332_v50 }
  0x27   :  { %1292 = vmatprep.subr.msk.bf16.mxu0 %vm1435_vm1, %v1290_v62  ;;  %1340 = vmatprep.subr.msk.bf16.mxu1 %vm1435_vm1, %v1338_v63 }
  0x2e   :  { %1295 = vmatpush3.bf16.xpose.msk.msra.mxu0 %vm1435_vm1, %v1293_v7  ;;  %1343 = vmatpush3.bf16.xpose.msk.msra.mxu1 %vm1435_vm1, %v1338_v63 }
  0x2f   :  { %1298 = vmatprep.subr.msk.bf16.mxu0 %vm1435_vm1, %v1296_v8  ;;  %1346 = vmatprep.subr.msk.bf16.mxu1 %vm1435_vm1, %v1344_v9 }
  0x36   :  { %1301 = vmatpush3.bf16.xpose.msk.msra.mxu0 %vm1435_vm1, %v1299_v16  ;;  %1349 = vmatpush3.bf16.xpose.msk.msra.mxu1 %vm1435_vm1, %v1344_v9 }
  0x37   :  { %1304 = vmatprep.subr.msk.bf16.mxu0 %vm1435_vm1, %v1302_v17  ;;  %1352 = vmatprep.subr.msk.bf16.mxu1 %vm1435_vm1, %v1350_v18 }
  0x3e   :  { %1307 = vmatpush3.bf16.xpose.msk.msra.mxu0 %vm1435_vm1, %v1305_v21  ;;  %1355 = vmatpush3.bf16.xpose.msk.msra.mxu1 %vm1435_vm1, %v1350_v18 }
  0x45   :  { %1148 = vmatmul.mubr.msk.f32.vlgmr.msra.gmra.mrb[0].mxu0 %vm124_vm0, %v1519_v32  ;;  %1230 = vmatmul.mubr.msk.f32.vlgmr.msra.gmra.mrb[0].mxu1 %vm124_vm0, %v69_v22 }
  0x46   :  { %1149 = vmatprep.mubr.msk.f32.mxu0 %vm124_vm0, %v69_v22  ;;  %1232 = vmatprep.mubr.msk.f32.mxu1 %vm124_vm0, %v70_v23 }
  0x49   :  { %1150 = vmatmul.mubr.msk.f32.gmra.mrb[2].mxu0 %vm124_vm0, %v69_v22  ;;  %1233 = vmatmul.mubr.msk.f32.gmra.mrb[2].mxu1 %vm124_vm0, %v71_v4 }
  0x4a   :  { %1151 = vmatprep.mubr.msk.f32.mxu0 %vm124_vm0, %v70_v23  ;;  %1235 = vmatprep.mubr.msk.f32.mxu1 %vm124_vm0, %v72_v24 }
  0x4d   :  { %1152 = vmatmul.mubr.msk.f32.gmra.mrb[4].mxu0 %vm124_vm0, %v70_v23  ;;  %1236 = vmatmul.mubr.msk.f32.gmra.mrb[4].mxu1 %vm124_vm0, %v73_v25 }
  0x4e   :  { %1153 = vmatprep.mubr.msk.f32.mxu0 %vm124_vm0, %v71_v4  ;;  %1238 = vmatprep.mubr.msk.f32.mxu1 %vm124_vm0, %v74_v26 }
  0x51   :  { %1154 = vmatmul.mubr.msk.f32.gmra.mrb[6].mxu0 %vm124_vm0, %v71_v4  ;;  %1239 = vmatmul.mubr.msk.f32.gmra.mrb[6].mxu1 %vm124_vm0, %v75_v27 }
  0x52   :  { %1155 = vmatprep.mubr.msk.f32.mxu0 %vm124_vm0, %v72_v24  ;;  %620 = vmatprep.mubr.f32.mxu1 %v1393_v29 }
  0x55   :  { %1156 = vmatmul.mubr.msk.f32.gmra.mrb[8].mxu0 %vm124_vm0, %v72_v24 }
  0x56   :  { %1157 = vmatprep.mubr.msk.f32.mxu0 %vm124_vm0, %v73_v25 }
  0x59   :  { %1158 = vmatmul.mubr.msk.f32.gmra.mrb[10].mxu0 %vm124_vm0, %v73_v25 }
  0x5a   :  { %1159 = vmatprep.mubr.msk.f32.mxu0 %vm124_vm0, %v74_v26 }
  0x5d   :  { %1160 = vmatmul.mubr.msk.f32.gmra.mrb[12].mxu0 %vm124_vm0, %v74_v26 }
  0x5e   :  { %1161 = vmatprep.mubr.msk.f32.mxu0 %vm124_vm0, %v75_v27 }
  0x61   :  { %1162 = vmatmul.mubr.msk.f32.gmra.mrb[14].mxu0 %vm124_vm0, %v75_v27 }
  0x62   :  { %1257 = vmatprep.mubr.msk.f32.mxu0 %vm549_vm2, %v1724_v28 }
  0x89   :  { %v87_v30 = vpop.permute.xlu0 %86  ;;  %v97_v31 = vpop.permute.xlu1 %96 }
  0x8f   :  { %v92_v32 = vpop.permute.xlu0 %91  ;;  %v102_v33 = vpop.permute.xlu1 %101 }
  0x93   :  { %v1729_v42 = vpop.permute.xlu0 %106  ;;  %v1731_v43 = vpop.permute.xlu1 %111 }
  0x97   :  { %v122_v7 = vpop.permute.xlu1 %121  ;;  %v117_v10 = vpop.permute.xlu0 %116 }
 0x118   :  { %v359_v34 = vpop.f32.mrb[0].mxu0  ;;  %v1231_v35 = vpop.f32.mrb[0].mxu1 }
 0x119   :  { %v478_v36 = vadd.f32 %v1231_v35, %v92_v32  ;;  %v361_v37 = vpop.f32.mrb[1].mxu0  ;;  %v472_v38 = vpop.f32.mrb[1].mxu1  ;;  %v360_v40 = vadd.f32 %v359_v34, %v87_v30 }
 0x11a   :  { %v473_v39 = vadd.f32 %v472_v38, %v87_v30  ;;  %v362_v44 = vadd.f32 %v361_v37, %v87_v30 }
 0x11b   :  { %v516_v41 = vmax.f32 %v478_v36, 0.0  ;;  %v511_v55 = vmax.f32 %v360_v40, 0.0 }
 0x11c   :  { %v513_v45 = vmax.f32 %v473_v39, 0.0  ;;  %v365_v46 = vpop.f32.mrb[2].mxu0  ;;  %v1234_v47 = vpop.f32.mrb[2].mxu1  ;;  %v512_v58 = vmax.f32 %v362_v44, 0.0  ;;  %v536_v39 = vld [vmem:[%s1902_s3 + $0x8] sm:$0xff] }
 0x11d   :  { %v366_v48 = vadd.f32 %v365_v46, %v92_v32  ;;  %v488_v49 = vadd.f32 %v1234_v47, %v102_v33  ;;  %v367_v50 = vpop.f32.mrb[3].mxu0  ;;  %v482_v51 = vpop.f32.mrb[3].mxu1 }
 0x11e   :  { %v1372_v52 = vpack.c.bf16 %v516_v41, %v513_v45  ;;  %v368_v53 = vadd.f32 %v367_v50, %v92_v32  ;;  %v483_v54 = vadd.f32 %v482_v51, %v97_v31 }
 0x11f   :  { %v514_v56 = vmax.f32 %v366_v48, 0.0  ;;  %v522_v57 = vmax.f32 %v488_v49, 0.0 }
 0x120   :  { %v515_v59 = vmax.f32 %v368_v53, 0.0  ;;  %v519_v60 = vmax.f32 %v483_v54, 0.0  ;;  %v371_v61 = vpop.f32.mrb[4].mxu0  ;;  %v1237_v62 = vpop.f32.mrb[4].mxu1  ;;  %1373 = vmatprep.subr.bf16.mxu0 %v1372_v52 }
 0x121   :  { %v1358_v63 = vpack.c.bf16 %v514_v56, %v511_v55  ;;  %v498_v0 = vadd.f32 %v1237_v62, %v1731_v43  ;;  %v373_v1 = vpop.f32.mrb[5].mxu0  ;;  %v492_v2 = vpop.f32.mrb[5].mxu1  ;;  %1375 = vmatpush3.bf16.msra.mxu0 %v1372_v52  ;;  %v372_v8 = vadd.f32 %v371_v61, %v97_v31 }
 0x122   :  { %v1356_v3 = vpack.c.bf16 %v515_v59, %v512_v58  ;;  %v1376_v5 = vpack.c.bf16 %v522_v57, %v519_v60  ;;  %v493_v6 = vadd.f32 %v492_v2, %v1729_v42  ;;  %v374_v11 = vadd.f32 %v373_v1, %v97_v31 }
 0x123   :  { %v528_v9 = vmax.f32 %v498_v0, 0.0  ;;  %v517_v22 = vmax.f32 %v372_v8, 0.0 }
 0x124   :  { %v525_v12 = vmax.f32 %v493_v6, 0.0  ;;  %v377_v13 = vpop.f32.mrb[6].mxu0  ;;  %v1240_v14 = vpop.f32.mrb[6].mxu1  ;;  %1357 = vmatprep.subr.bf16.mxu1 %v1356_v3  ;;  %1377 = vmatprep.subr.bf16.mxu0 %v1376_v5  ;;  %v518_v24 = vmax.f32 %v374_v11, 0.0 }
 0x125   :  { %v378_v15 = vadd.f32 %v377_v13, %v102_v33  ;;  %v508_v16 = vadd.f32 %v1240_v14, %v122_v7  ;;  %v379_v17 = vpop.f32.mrb[7].mxu0  ;;  %v502_v18 = vpop.f32.mrb[7].mxu1  ;;  %1359 = vmatpush1.bf16.msra.mxu1 %v1358_v63  ;;  %1379 = vmatpush3.bf16.msra.mxu0 %v1376_v5 }
 0x126   :  { %v1380_v19 = vpack.c.bf16 %v528_v9, %v525_v12  ;;  %v380_v20 = vadd.f32 %v379_v17, %v102_v33  ;;  %v503_v21 = vadd.f32 %v502_v18, %v117_v10  ;;  %v542_v63 = vpop.permute.xlu0 %541  ;;  %v547_v6 = vpop.permute.xlu1 %546 }
 0x127   :  { %v520_v23 = vmax.f32 %v378_v15, 0.0  ;;  %v534_v4 = vmax.f32 %v508_v16, 0.0 }
 0x128   :  { %v521_v25 = vmax.f32 %v380_v20, 0.0  ;;  %v531_v26 = vmax.f32 %v503_v21, 0.0  ;;  %v383_v27 = vpop.f32.mrb[8].mxu0  ;;  %1381 = vmatprep.subr.bf16.mxu0 %v1380_v19 }
 0x129   :  { %v1362_v30 = vpack.c.bf16 %v520_v23, %v517_v22  ;;  %v385_v31 = vpop.f32.mrb[9].mxu0  ;;  %1383 = vmatpush3.bf16.msra.mxu0 %v1380_v19  ;;  %v384_v35 = vadd.f32 %v383_v27, %v1729_v42 }
 0x12a   :  { %v1360_v32 = vpack.c.bf16 %v521_v25, %v518_v24  ;;  %v1384_v34 = vpack.c.bf16 %v534_v4, %v531_v26  ;;  %v386_v36 = vadd.f32 %v385_v31, %v1729_v42 }
 0x12b   :  { %v523_v41 = vmax.f32 %v384_v35, 0.0 }
 0x12c   :  { %v389_v37 = vpop.f32.mrb[10].mxu0  ;;  %1361 = vmatprep.subr.bf16.mxu1 %v1360_v32  ;;  %1385 = vmatprep.subr.bf16.mxu0 %v1384_v34  ;;  %v524_v45 = vmax.f32 %v386_v36, 0.0 }
 0x12d   :  { %v390_v33 = vadd.f32 %v389_v37, %v1731_v43  ;;  %v391_v38 = vpop.f32.mrb[11].mxu0  ;;  %1363 = vmatpush1.bf16.msra.mxu1 %v1362_v30  ;;  %1387 = vmatpush3.bf16.msra.mxu0 %v1384_v34 }
 0x12e   :  { %v392_v40 = vadd.f32 %v391_v38, %v1731_v43 }
 0x12f   :  { %v526_v44 = vmax.f32 %v390_v33, 0.0 }
 0x130   :  { %v527_v46 = vmax.f32 %v392_v40, 0.0  ;;  %v395_v47 = vpop.f32.mrb[12].mxu0  ;;  %1258 = vmatmul.mubr.msk.f32.vlgmr.msra.gmra.mrb[16].mxu0 %vm549_vm2, %v536_v39 }
 0x131   :  { %v1366_v42 = vpack.c.bf16 %v526_v44, %v523_v41  ;;  %v397_v48 = vpop.f32.mrb[13].mxu0  ;;  %v396_v50 = vadd.f32 %v395_v47, %v117_v10 }
 0x132   :  { %v1364_v49 = vpack.c.bf16 %v527_v46, %v524_v45  ;;  %v398_v51 = vadd.f32 %v397_v48, %v117_v10 }
 0x133   :  { %v529_v56 = vmax.f32 %v396_v50, 0.0 }
 0x134   :  { %v401_v52 = vpop.f32.mrb[14].mxu0  ;;  %1365 = vmatprep.subr.bf16.mxu1 %v1364_v49  ;;  %v530_v57 = vmax.f32 %v398_v51, 0.0 }
 0x135   :  { %v402_v53 = vadd.f32 %v401_v52, %v122_v7  ;;  %v403_v54 = vpop.f32.mrb[15].mxu0  ;;  %1367 = vmatpush1.bf16.msra.mxu1 %v1366_v42 }
 0x136   :  { %v404_v55 = vadd.f32 %v403_v54, %v122_v7 }
 0x137   :  { %v532_v43 = vmax.f32 %v402_v53, 0.0 }
 0x138   :  { %v533_v58 = vmax.f32 %v404_v55, 0.0 }
 0x139   :  { %v1370_v59 = vpack.c.bf16 %v532_v43, %v529_v56 }
 0x13a   :  { %v1368_v60 = vpack.c.bf16 %v533_v58, %v530_v57 }
 0x13c   :  { %1369 = vmatprep.subr.bf16.mxu1 %v1368_v60 }
 0x13d   :  { %1371 = vmatpush1.bf16.msra.mxu1 %v1370_v59 }
 0x140   :  { %1111 = vmatmul.mubr.msk.f32.vlgmr.msra.gmra.mrb[8].mxu1 %vm549_vm2, %v1724_v28 }
 0x141   :  { %626 = vmatprep.mubr.f32.mxu1 %v1393_v29 }
 0x144   :  { %1112 = vmatmul.mubr.msk.f32.gmra.mrb[10].mxu1 %vm549_vm2, %v536_v39 }
 0x203   :  { %v1259_v61 = vpop.f32.mrb[16].mxu0 }
 0x204   :  { %v699_v62 = vpop.f32.mrb[17].mxu0  ;;  %v705_v13 = vadd.f32 %v1259_v61, %v547_v6 }
 0x205   :  { %v700_v12 = vadd.f32 %v699_v62, %v542_v63 }
 0x206   :  { %v713_v15 = vmax.f32 %v705_v13, 0.0 }
 0x207   :  { %v710_v14 = vmax.f32 %v700_v12, 0.0 }
 0x213   :  { %v622_v0 = vpop.f32.mrb[8].mxu1 }
 0x214   :  { %v623_v1 = vadd.f32 %v622_v0, %v542_v63  ;;  %v624_v2 = vpop.f32.mrb[9].mxu1 }
 0x215   :  { %v625_v3 = vadd.f32 %v624_v2, %v542_v63 }
 0x216   :  { %v708_v5 = vmax.f32 %v623_v1, 0.0 }
 0x217   :  { %v709_v7 = vmax.f32 %v625_v3, 0.0  ;;  %v628_v8 = vpop.f32.mrb[10].mxu1 }
 0x218   :  { %v629_v9 = vadd.f32 %v628_v8, %v547_v6  ;;  %v630_v10 = vpop.f32.mrb[11].mxu1  ;;  %714 = vxpose.xlu0.b32.start [1/2] (short) %v708_v5, 128 }
 0x219   :  { %v631_v11 = vadd.f32 %v630_v10, %v547_v6  ;;  %746 = vxpose.xlu1.b32.start [1/2] (short) %v709_v7, 128 }
 0x21a   :  { %v711_v28 = vmax.f32 %v629_v9, 0.0 }
 0x21b   :  { %v712_v29 = vmax.f32 %v631_v11, 0.0 }
 0x21c   :  { %715 = vxpose.xlu0.b32.end [2/2] (short) %v711_v28, 128 }
 0x21d   :  { %747 = vxpose.xlu1.b32.end [2/2] (short) %v712_v29, 128 }
 0x255   :  { %778 = vxpose.xlu0.b32.start [1/2] (short) %v710_v14, 128 }
 0x259   :  { %779 = vxpose.xlu0.b32.end [2/2] (short) %v713_v15, 128 }
 0x298   :  { %v730_v16 = vpop.trf.xlu0 }
 0x299   :  { %811 = vst.msk [vmem:[#allocation2] sm:$0xff] %vm810_vm3, %v730_v16  ;;  %v762_v17 = vpop.trf.xlu1 }
 0x29a   :  { %827 = vst.msk [vmem:[#allocation2 + $0x80] sm:$0xff] %vm810_vm3, %v762_v17 }
 0x29c   :  { %v731_v18 = vpop.trf.xlu0 }
 0x29d   :  { %812 = vst.msk [vmem:[#allocation2 + $0x8] sm:$0xff] %vm810_vm3, %v731_v18  ;;  %v763_v19 = vpop.trf.xlu1 }
 0x29e   :  { %828 = vst.msk [vmem:[#allocation2 + $0x88] sm:$0xff] %vm810_vm3, %v763_v19 }
 0x2a0   :  { %v962_v20 = vld [vmem:[#allocation2] sm:$0xff]  ;;  %v732_v21 = vpop.trf.xlu0 }
 0x2a1   :  { %963 = vst [vmem:[%s1904_s5] sm:$0xff] %v962_v20  ;;  %813 = vst.msk [vmem:[#allocation2 + $0x10] sm:$0xff] %vm810_vm3, %v732_v21  ;;  %v994_v22 = vld [vmem:[#allocation2 + $0x80] sm:$0xff]  ;;  %v764_v23 = vpop.trf.xlu1 }
 0x2a2   :  { %995 = vst [vmem:[%s1904_s5 + $0x80] sm:$0xff] %v994_v22  ;;  %829 = vst.msk [vmem:[#allocation2 + $0x90] sm:$0xff] %vm810_vm3, %v764_v23 }
 0x2a4   :  { %v964_v4 = vld [vmem:[#allocation2 + $0x8] sm:$0xff]  ;;  %v733_v24 = vpop.trf.xlu0 }
 0x2a5   :  { %965 = vst [vmem:[%s1904_s5 + $0x8] sm:$0xff] %v964_v4  ;;  %814 = vst.msk [vmem:[#allocation2 + $0x18] sm:$0xff] %vm810_vm3, %v733_v24  ;;  %v996_v25 = vld [vmem:[#allocation2 + $0x88] sm:$0xff]  ;;  %v765_v26 = vpop.trf.xlu1 }
 0x2a6   :  { %997 = vst [vmem:[%s1904_s5 + $0x88] sm:$0xff] %v996_v25  ;;  %830 = vst.msk [vmem:[#allocation2 + $0x98] sm:$0xff] %vm810_vm3, %v765_v26 }
 0x2a8   :  { %v966_v27 = vld [vmem:[#allocation2 + $0x10] sm:$0xff]  ;;  %v734_v30 = vpop.trf.xlu0 }
 0x2a9   :  { %967 = vst [vmem:[%s1904_s5 + $0x10] sm:$0xff] %v966_v27  ;;  %815 = vst.msk [vmem:[#allocation2 + $0x20] sm:$0xff] %vm810_vm3, %v734_v30  ;;  %v998_v31 = vld [vmem:[#allocation2 + $0x90] sm:$0xff]  ;;  %v766_v32 = vpop.trf.xlu1 }
 0x2aa   :  { %999 = vst [vmem:[%s1904_s5 + $0x90] sm:$0xff] %v998_v31  ;;  %831 = vst.msk [vmem:[#allocation2 + $0xa0] sm:$0xff] %vm810_vm3, %v766_v32 }
 0x2ac   :  { %v968_v34 = vld [vmem:[#allocation2 + $0x18] sm:$0xff]  ;;  %v735_v35 = vpop.trf.xlu0 }
 0x2ad   :  { %969 = vst [vmem:[%s1904_s5 + $0x18] sm:$0xff] %v968_v34  ;;  %816 = vst.msk [vmem:[#allocation2 + $0x28] sm:$0xff] %vm810_vm3, %v735_v35  ;;  %v1000_v36 = vld [vmem:[#allocation2 + $0x98] sm:$0xff]  ;;  %v767_v37 = vpop.trf.xlu1 }
 0x2ae   :  { %1001 = vst [vmem:[%s1904_s5 + $0x98] sm:$0xff] %v1000_v36  ;;  %832 = vst.msk [vmem:[#allocation2 + $0xa8] sm:$0xff] %vm810_vm3, %v767_v37 }
 0x2b0   :  { %v970_v33 = vld [vmem:[#allocation2 + $0x20] sm:$0xff]  ;;  %v736_v38 = vpop.trf.xlu0 }
 0x2b1   :  { %971 = vst [vmem:[%s1904_s5 + $0x20] sm:$0xff] %v970_v33  ;;  %817 = vst.msk [vmem:[#allocation2 + $0x30] sm:$0xff] %vm810_vm3, %v736_v38  ;;  %v1002_v39 = vld [vmem:[#allocation2 + $0xa0] sm:$0xff]  ;;  %v768_v40 = vpop.trf.xlu1 }
 0x2b2   :  { %1003 = vst [vmem:[%s1904_s5 + $0xa0] sm:$0xff] %v1002_v39  ;;  %833 = vst.msk [vmem:[#allocation2 + $0xb0] sm:$0xff] %vm810_vm3, %v768_v40 }
 0x2b4   :  { %v972_v41 = vld [vmem:[#allocation2 + $0x28] sm:$0xff]  ;;  %v737_v44 = vpop.trf.xlu0 }
 0x2b5   :  { %973 = vst [vmem:[%s1904_s5 + $0x28] sm:$0xff] %v972_v41  ;;  %818 = vst.msk [vmem:[#allocation2 + $0x38] sm:$0xff] %vm810_vm3, %v737_v44  ;;  %v1004_v45 = vld [vmem:[#allocation2 + $0xa8] sm:$0xff]  ;;  %v769_v46 = vpop.trf.xlu1 }
 0x2b6   :  { %1005 = vst [vmem:[%s1904_s5 + $0xa8] sm:$0xff] %v1004_v45  ;;  %834 = vst.msk [vmem:[#allocation2 + $0xb8] sm:$0xff] %vm810_vm3, %v769_v46 }
 0x2b8   :  { %v974_v47 = vld [vmem:[#allocation2 + $0x30] sm:$0xff]  ;;  %v738_v42 = vpop.trf.xlu0 }
 0x2b9   :  { %975 = vst [vmem:[%s1904_s5 + $0x30] sm:$0xff] %v974_v47  ;;  %819 = vst.msk [vmem:[#allocation2 + $0x40] sm:$0xff] %vm810_vm3, %v738_v42  ;;  %v1006_v48 = vld [vmem:[#allocation2 + $0xb0] sm:$0xff]  ;;  %v770_v49 = vpop.trf.xlu1 }
 0x2ba   :  { %1007 = vst [vmem:[%s1904_s5 + $0xb0] sm:$0xff] %v1006_v48  ;;  %835 = vst.msk [vmem:[#allocation2 + $0xc0] sm:$0xff] %vm810_vm3, %v770_v49 }
 0x2bc   :  { %v976_v50 = vld [vmem:[#allocation2 + $0x38] sm:$0xff]  ;;  %v739_v51 = vpop.trf.xlu0 }
 0x2bd   :  { %977 = vst [vmem:[%s1904_s5 + $0x38] sm:$0xff] %v976_v50  ;;  %820 = vst.msk [vmem:[#allocation2 + $0x48] sm:$0xff] %vm810_vm3, %v739_v51  ;;  %v1008_v52 = vld [vmem:[#allocation2 + $0xb8] sm:$0xff]  ;;  %v771_v53 = vpop.trf.xlu1 }
 0x2be   :  { %1009 = vst [vmem:[%s1904_s5 + $0xb8] sm:$0xff] %v1008_v52  ;;  %836 = vst.msk [vmem:[#allocation2 + $0xc8] sm:$0xff] %vm810_vm3, %v771_v53 }
 0x2c0   :  { %v978_v54 = vld [vmem:[#allocation2 + $0x40] sm:$0xff]  ;;  %v740_v55 = vpop.trf.xlu0 }
 0x2c1   :  { %979 = vst [vmem:[%s1904_s5 + $0x40] sm:$0xff] %v978_v54  ;;  %821 = vst.msk [vmem:[#allocation2 + $0x50] sm:$0xff] %vm810_vm3, %v740_v55  ;;  %v1010_v56 = vld [vmem:[#allocation2 + $0xc0] sm:$0xff]  ;;  %v772_v43 = vpop.trf.xlu1 }
 0x2c2   :  { %1011 = vst [vmem:[%s1904_s5 + $0xc0] sm:$0xff] %v1010_v56  ;;  %837 = vst.msk [vmem:[#allocation2 + $0xd0] sm:$0xff] %vm810_vm3, %v772_v43 }
 0x2c4   :  { %v980_v57 = vld [vmem:[#allocation2 + $0x48] sm:$0xff]  ;;  %v741_v58 = vpop.trf.xlu0 }
 0x2c5   :  { %981 = vst [vmem:[%s1904_s5 + $0x48] sm:$0xff] %v980_v57  ;;  %822 = vst.msk [vmem:[#allocation2 + $0x58] sm:$0xff] %vm810_vm3, %v741_v58  ;;  %v1012_v59 = vld [vmem:[#allocation2 + $0xc8] sm:$0xff]  ;;  %v773_v60 = vpop.trf.xlu1 }
 0x2c6   :  { %1013 = vst [vmem:[%s1904_s5 + $0xc8] sm:$0xff] %v1012_v59  ;;  %838 = vst.msk [vmem:[#allocation2 + $0xd8] sm:$0xff] %vm810_vm3, %v773_v60 }
 0x2c8   :  { %v982_v61 = vld [vmem:[#allocation2 + $0x50] sm:$0xff]  ;;  %v742_v62 = vpop.trf.xlu0 }
 0x2c9   :  { %983 = vst [vmem:[%s1904_s5 + $0x50] sm:$0xff] %v982_v61  ;;  %823 = vst.msk [vmem:[#allocation2 + $0x60] sm:$0xff] %vm810_vm3, %v742_v62  ;;  %v1014_v63 = vld [vmem:[#allocation2 + $0xd0] sm:$0xff]  ;;  %v774_v0 = vpop.trf.xlu1 }
 0x2ca   :  { %1015 = vst [vmem:[%s1904_s5 + $0xd0] sm:$0xff] %v1014_v63  ;;  %839 = vst.msk [vmem:[#allocation2 + $0xe0] sm:$0xff] %vm810_vm3, %v774_v0 }
 0x2cc   :  { %v984_v1 = vld [vmem:[#allocation2 + $0x58] sm:$0xff]  ;;  %v743_v2 = vpop.trf.xlu0 }
 0x2cd   :  { %985 = vst [vmem:[%s1904_s5 + $0x58] sm:$0xff] %v984_v1  ;;  %824 = vst.msk [vmem:[#allocation2 + $0x68] sm:$0xff] %vm810_vm3, %v743_v2  ;;  %v1016_v3 = vld [vmem:[#allocation2 + $0xd8] sm:$0xff]  ;;  %v775_v5 = vpop.trf.xlu1 }
 0x2ce   :  { %1017 = vst [vmem:[%s1904_s5 + $0xd8] sm:$0xff] %v1016_v3  ;;  %840 = vst.msk [vmem:[#allocation2 + $0xe8] sm:$0xff] %vm810_vm3, %v775_v5 }
 0x2d0   :  { %v986_v6 = vld [vmem:[#allocation2 + $0x60] sm:$0xff]  ;;  %v744_v7 = vpop.trf.xlu0 }
 0x2d1   :  { %987 = vst [vmem:[%s1904_s5 + $0x60] sm:$0xff] %v986_v6  ;;  %825 = vst.msk [vmem:[#allocation2 + $0x70] sm:$0xff] %vm810_vm3, %v744_v7  ;;  %v1018_v8 = vld [vmem:[#allocation2 + $0xe0] sm:$0xff]  ;;  %v776_v9 = vpop.trf.xlu1 }
 0x2d2   :  { %1019 = vst [vmem:[%s1904_s5 + $0xe0] sm:$0xff] %v1018_v8  ;;  %841 = vst.msk [vmem:[#allocation2 + $0xf0] sm:$0xff] %vm810_vm3, %v776_v9 }
 0x2d4   :  { %v988_v10 = vld [vmem:[#allocation2 + $0x68] sm:$0xff]  ;;  %v745_v11 = vpop.trf.xlu0 }
 0x2d5   :  { %989 = vst [vmem:[%s1904_s5 + $0x68] sm:$0xff] %v988_v10  ;;  %826 = vst.msk [vmem:[#allocation2 + $0x78] sm:$0xff] %vm810_vm3, %v745_v11  ;;  %v1020_v28 = vld [vmem:[#allocation2 + $0xe8] sm:$0xff]  ;;  %v777_v29 = vpop.trf.xlu1 }
 0x2d6   :  { %1021 = vst [vmem:[%s1904_s5 + $0xe8] sm:$0xff] %v1020_v28  ;;  %842 = vst.msk [vmem:[#allocation2 + $0xf8] sm:$0xff] %vm810_vm3, %v777_v29 }
 0x2d8   :  { %v990_v12 = vld [vmem:[#allocation2 + $0x70] sm:$0xff]  ;;  %v794_v13 = vpop.trf.xlu0 }
 0x2d9   :  { %991 = vst [vmem:[%s1904_s5 + $0x70] sm:$0xff] %v990_v12  ;;  %843 = vst.msk [vmem:[#allocation2 + $0x100] sm:$0xff] %vm810_vm3, %v794_v13  ;;  %v1022_v14 = vld [vmem:[#allocation2 + $0xf0] sm:$0xff] }
 0x2da   :  { %1023 = vst [vmem:[%s1904_s5 + $0xf0] sm:$0xff] %v1022_v14 }
 0x2dc   :  { %v992_v15 = vld [vmem:[#allocation2 + $0x78] sm:$0xff]  ;;  %v795_v16 = vpop.trf.xlu0 }
 0x2dd   :  { %993 = vst [vmem:[%s1904_s5 + $0x78] sm:$0xff] %v992_v15  ;;  %844 = vst.msk [vmem:[#allocation2 + $0x108] sm:$0xff] %vm810_vm3, %v795_v16  ;;  %v1024_v17 = vld [vmem:[#allocation2 + $0xf8] sm:$0xff] }
 0x2de   :  { %1025 = vst [vmem:[%s1904_s5 + $0xf8] sm:$0xff] %v1024_v17 }
 0x2e0   :  { %v1026_v18 = vld [vmem:[#allocation2 + $0x100] sm:$0xff]  ;;  %v796_v19 = vpop.trf.xlu0 }
 0x2e1   :  { %1027 = vst [vmem:[%s1904_s5 + $0x100] sm:$0xff] %v1026_v18  ;;  %845 = vst.msk [vmem:[#allocation2 + $0x110] sm:$0xff] %vm810_vm3, %v796_v19 }
 0x2e4   :  { %v1028_v20 = vld [vmem:[#allocation2 + $0x108] sm:$0xff]  ;;  %v797_v21 = vpop.trf.xlu0 }
 0x2e5   :  { %1029 = vst [vmem:[%s1904_s5 + $0x108] sm:$0xff] %v1028_v20  ;;  %846 = vst.msk [vmem:[#allocation2 + $0x118] sm:$0xff] %vm810_vm3, %v797_v21 }
 0x2e8   :  { %v1030_v22 = vld [vmem:[#allocation2 + $0x110] sm:$0xff]  ;;  %v798_v23 = vpop.trf.xlu0 }
 0x2e9   :  { %1031 = vst [vmem:[%s1904_s5 + $0x110] sm:$0xff] %v1030_v22  ;;  %847 = vst.msk [vmem:[#allocation2 + $0x120] sm:$0xff] %vm810_vm3, %v798_v23 }
 0x2ec   :  { %v1032_v4 = vld [vmem:[#allocation2 + $0x118] sm:$0xff]  ;;  %v799_v24 = vpop.trf.xlu0 }
 0x2ed   :  { %1033 = vst [vmem:[%s1904_s5 + $0x118] sm:$0xff] %v1032_v4  ;;  %848 = vst.msk [vmem:[#allocation2 + $0x128] sm:$0xff] %vm810_vm3, %v799_v24 }
 0x2f0   :  { %v1034_v25 = vld [vmem:[#allocation2 + $0x120] sm:$0xff]  ;;  %v800_v26 = vpop.trf.xlu0 }
 0x2f1   :  { %1035 = vst [vmem:[%s1904_s5 + $0x120] sm:$0xff] %v1034_v25 }
 0x2f4   :  { %v1036_v27 = vld [vmem:[#allocation2 + $0x128] sm:$0xff]  ;;  %v801_v30 = vpop.trf.xlu0 }
 0x2f5   :  { %1037 = vst [vmem:[%s1904_s5 + $0x128] sm:$0xff] %v1036_v27 }
 0x2f8   :  { %v802_v31 = vpop.trf.xlu0 }
 0x2fc   :  { %v803_v32 = vpop.trf.xlu0 }
 0x300   :  { %v804_v34 = vpop.trf.xlu0 }
 0x304   :  { %v805_v35 = vpop.trf.xlu0 }
 0x308   :  { %v806_v36 = vpop.trf.xlu0 }
 0x30c   :  { %v807_v37 = vpop.trf.xlu0 }
 0x310   :  { %v808_v33 = vpop.trf.xlu0 }
 0x314   :  { %v809_v38 = vpop.trf.xlu0 }

</bundles_post_ra>
